<compile_context>
chip_gen: v6e
topology: v6e:2x2x1
jax: 0.10.0
libtpu: 0.0.40
codegen_flags: <defaults>
</compile_context>

<pallas_src>
import functools

import numpy as np

import jax
import jax.numpy as jnp
from jax import lax
from jax.experimental import pallas as pl
from jax.experimental.pallas import tpu as pltpu


# ----------------------------- config ---------------------------------------
FUTURE_NUM_FRAMES = 6          # cfg['future_num_frames']
OUTPUT_VEL = False             # cfg['output_vel']   (unused in forward)
LEARNER_W = 0.0                # cfg['learner_w'] == 0 -> policy_network path
FEAT_DIM = 14                  # per-agent feature dim (state = states[..., :-2])
IN_DIM = FEAT_DIM + 2          # full per-agent row (adds ori_x, ori_y)
HIDDEN = 32
OUT_DIM = FUTURE_NUM_FRAMES * 2
CS_ROWS = 2                    # cos/sin rows appended to the fused output
OUT_ROWS = OUT_DIM + CS_ROWS   # 14 output rows = [action(12) | cos | sin]
GS_DIM = 16                    # graph-state rows, padded 14 -> 16 (aligned K)

# Graph-state row layout (chosen so no scratch store straddles a vreg row):
#   0..4 : rotated x history      5 : rotated goal x
#   6    : speed                  7 : constant 1.0 (b1 folded into W1 col 7)
#   8..12: rotated y history     13 : rotated goal y
#   14   : agent mask flag       15 : constant 0.0 (K padding, W1 col 15 = 0)
GS_BIAS_ROW = 7
GS_PAD_ROW = 15

LANE = 128
MAX_TILE_LANES = 8192          # 64 x 128 lanes per grid step


# ------------------------- fused Pallas kernel -------------------------------
def _fused_kernel(x_ref, w1t_ref, w2t_ref, b2_ref, out_ref, gs_scr):
    """Fused ego-frame graph-state build + 2-layer MLP policy head.

    Feature-major layout (lane dim = agents):
      x_ref  : (16, TN) rows = [px(5), py(5), speed, goal_xy(2), mask, ori_xy(2)]
      w1t_ref: (32, 16) bf16, col 7 = b1 (bias fold), col 15 = 0 (K pad)
      w2t_ref: (12, 32) bf16
      b2_ref : (12, 1)  f32
      out_ref: (14, TN) rows = [action(12), cos, sin]   (lane-dense)
      gs_scr : (16, TN) f32 VMEM scratch for the graph state
    """
    x = x_ref[...]
    ox = x[14:15, :]
    oy = x[15:16, :]

    # Goal heading cos/sin via rsqrt on the EUP (atan2(0,0) -> cos=1, sin=0).
    dxy = x[11:13, :] - x[14:16, :]              # (2, TN) = [dx; dy]
    dx = dxy[0:1, :]
    dy = dxy[1:2, :]
    r2 = dx * dx + dy * dy
    safe = r2 > 0.0
    inv = lax.rsqrt(jnp.where(safe, r2, 1.0))
    unit_x = lax.broadcasted_iota(jnp.int32, dxy.shape, 0) == 0
    cs = jnp.where(safe, dxy * inv, jnp.where(unit_x, 1.0, 0.0))   # [cos; sin]
    c = cs[0:1, :]
    s = cs[1:2, :]

    # History & goal into the goal-heading frame. Aligned row layout: every
    # store below lies inside a single 8-sublane vreg row (no straddle).
    xs = x[0:5, :] - ox
    ys = x[5:10, :] - oy
    gs_scr[0:5, :] = xs * c + ys * s
    gs_scr[5:6, :] = dx * c + dy * s
    gs_scr[6:7, :] = x[10:11, :]                        # speed
    gs_scr[GS_BIAS_ROW:GS_BIAS_ROW + 1, :] = jnp.ones_like(c)
    gs_scr[8:13, :] = ys * c - xs * s
    gs_scr[13:14, :] = dy * c - dx * s
    gs_scr[14:15, :] = x[13:14, :]                      # mask flag
    gs_scr[GS_PAD_ROW:GS_PAD_ROW + 1, :] = jnp.zeros_like(c)

    # Policy MLP on the MXU: bf16 operands, f32 accumulate. b1 is folded into
    # w1t via the constant-1 graph-state row; only b2 remains as a small add.
    gs = gs_scr[...].astype(jnp.bfloat16)
    h = jnp.dot(w1t_ref[...], gs, preferred_element_type=jnp.float32)
    h = jnp.maximum(h, 0.0)
    o = jnp.dot(w2t_ref[...], h.astype(jnp.bfloat16),
                preferred_element_type=jnp.float32) + b2_ref[...]

    # Lane-dense output: one aligned 12-row store + one 2-row cs store.
    out_ref[0:OUT_DIM, :] = o
    out_ref[OUT_DIM:OUT_ROWS, :] = cs


def _fused_call(x_t, w1t, w2t, b2, tn):
    _, n_pad = x_t.shape
    grid = (n_pad // tn,)
    return pl.pallas_call(
        _fused_kernel,
        grid=grid,
        out_shape=jax.ShapeDtypeStruct((OUT_ROWS, n_pad), jnp.float32),
        in_specs=[
            pl.BlockSpec((IN_DIM, tn), lambda i: (0, i)),
            # Weights/biases: constant index_map -> stay VMEM-resident.
            pl.BlockSpec((HIDDEN, GS_DIM), lambda i: (0, 0)),
            pl.BlockSpec((OUT_DIM, HIDDEN), lambda i: (0, 0)),
            pl.BlockSpec((OUT_DIM, 1), lambda i: (0, 0)),
        ],
        out_specs=pl.BlockSpec((OUT_ROWS, tn), lambda i: (0, i)),
        scratch_shapes=[pltpu.VMEM((GS_DIM, tn), jnp.float32)],
        compiler_params=pltpu.CompilerParams(
            dimension_semantics=("parallel",),     # shard lane axis on v7x TCs
            vmem_limit_bytes=32 * 1024 * 1024,     # safe on v5e/v6e/v7x scoped
        ),
    )(x_t, w1t, w2t, b2)


# ------------------------------ tiling ---------------------------------------
def _choose_tiling(n):
    """Lane tile and padded length.

    Pads only to a multiple of 128 (plus < one tile of slack), caps tiles at
    8192 lanes, and guarantees >= 2 grid steps whenever N > 128 so the
    'parallel' axis can shard across both v7x TensorCores.
    """
    m = -(-n // LANE)                               # 128-lane groups
    if m <= 1:
        g = 1
    else:
        g = max(2, -(-m // (MAX_TILE_LANES // LANE)))
    tm = -(-m // g)
    tn = tm * LANE
    return tn, g * tn


# ------------------------------ model wrapper --------------------------------
def init_params(key):
    k1, k2, k3, k4 = jax.random.split(key, 4)
    w1t = jax.random.normal(k1, (HIDDEN, GS_DIM), jnp.float32) * 0.1
    b1 = jax.random.normal(k2, (HIDDEN,), jnp.float32) * 0.01
    # Fold b1 into the constant-1 graph-state row; zero the padded K column.
    w1t = w1t.at[:, GS_BIAS_ROW].set(b1).at[:, GS_PAD_ROW].set(0.0)
    w2t = jax.random.normal(k3, (OUT_DIM, HIDDEN), jnp.float32) * 0.1
    b2 = jax.random.normal(k4, (OUT_DIM, 1), jnp.float32) * 0.01
    return {"w1t": w1t.astype(jnp.bfloat16),
            "w2t": w2t.astype(jnp.bfloat16),
            "b2": b2}


@functools.partial(jax.jit, static_argnames=("training",))
def forward(states, params, training=True):
    """Mirrors Model.forward (learner_w == 0 -> policy_network branch)."""
    b, a, _ = states.shape
    n = b * a
    state = states[..., :-2]                      # (B, A, 14)
    batch_ori_pos = states[..., -2:]              # (B, A, 2)
    agent_mask = state[..., -1] > 0.5             # (B, A) bool

    # TODO(synk): boolean-mask gather (state[agent_mask]) is dynamic-shaped;
    # compute densely over all B*A agents and return agent_mask instead.
    flat = states.reshape(n, IN_DIM)

    # One combined feature-major (16, n_pad) slab: a single XLA transpose+pad
    # materialization feeding the fused kernel.
    # TODO(synk): keep `states` feature-major upstream to drop this transpose.
    tn, n_pad = _choose_tiling(n)
    x_t = jnp.pad(flat.T, ((0, 0), (0, n_pad - n)))          # (16, n_pad)

    out_t = _fused_call(x_t, params["w1t"], params["w2t"], params["b2"], tn)

    action = out_t[:OUT_DIM, :n].T                            # (N, 12)
    c = out_t[OUT_DIM, :n]
    s = out_t[OUT_DIM + 1, :n]
    # get_rotate: R = [[c, s], [-s, c]] (rotation into the goal-heading frame).
    rotate = jnp.stack(
        [jnp.stack([c, s], -1), jnp.stack([-s, c], -1)], axis=-2)  # (N, 2, 2)

    flat_ori = batch_ori_pos.reshape(n, 2)
    # learner_w == 0 -> state_info = (0, 0)
    state_info = (jnp.zeros((), jnp.float32), jnp.zeros((), jnp.float32))
    action_preds = action.reshape(n, FUTURE_NUM_FRAMES, -1)
    return action_preds, flat_ori[:, None], rotate, state_info, agent_mask


# ------------------------ pure-JAX reference (check) -------------------------
def _reference(states, params):
    n = states.shape[0] * states.shape[1]
    flat = states.reshape(n, IN_DIM).astype(jnp.float32)
    px, py = flat[:, 0:5], flat[:, 5:10]
    speed, mflag = flat[:, 10:11], flat[:, 13:14]
    ox, oy = flat[:, 14:15], flat[:, 15:16]
    dx, dy = flat[:, 11:12] - ox, flat[:, 12:13] - oy
    r2 = dx * dx + dy * dy
    safe = r2 > 0.0
    inv = lax.rsqrt(jnp.where(safe, r2, 1.0))
    c = jnp.where(safe, dx * inv, 1.0)
    s = jnp.where(safe, dy * inv, 0.0)
    xs, ys = px - ox, py - oy
    gs = jnp.zeros((n, GS_DIM), jnp.float32)
    gs = gs.at[:, 0:5].set(xs * c + ys * s)
    gs = gs.at[:, 5:6].set(dx * c + dy * s)
    gs = gs.at[:, 6:7].set(speed)
    gs = gs.at[:, GS_BIAS_ROW:GS_BIAS_ROW + 1].set(1.0)
    gs = gs.at[:, 8:13].set(ys * c - xs * s)
    gs = gs.at[:, 13:14].set(dy * c - dx * s)
    gs = gs.at[:, 14:15].set(mflag)
    h = jnp.maximum(jnp.dot(gs.astype(jnp.bfloat16), params["w1t"].T,
                            preferred_element_type=jnp.float32), 0.0)
    o = jnp.dot(h.astype(jnp.bfloat16), params["w2t"].T,
                preferred_element_type=jnp.float32) + params["b2"][:, 0]
    return o, c[:, 0], s[:, 0]


# --------------------------------- main --------------------------------------
if __name__ == "__main__":
    key = jax.random.PRNGKey(0)
    k_states, k_params = jax.random.split(key)
    params = init_params(k_params)

    # Small shape (single grid step) and a larger one (multi-step parallel grid).
    for (B, A) in ((2, 8), (8, 64)):
        ks, km = jax.random.split(jax.random.fold_in(k_states, B * A))
        states = jax.random.normal(ks, (B, A, IN_DIM), jnp.float32)
        mask = (jax.random.uniform(km, (B, A)) > 0.3).astype(jnp.float32)
        states = states.at[..., FEAT_DIM - 1].set(mask)   # agent-mask flag feat

        outs = jax.block_until_ready(forward(states, params, training=True))
        action_preds, ori_pos, rotate, state_info, agent_mask = outs

        n = B * A
        assert action_preds.shape == (n, FUTURE_NUM_FRAMES, 2)
        assert ori_pos.shape == (n, 1, 2)
        assert rotate.shape == (n, 2, 2)
        assert agent_mask.shape == (B, A)

        ref_o, ref_c, ref_s = _reference(states, params)
        np.testing.assert_allclose(np.asarray(action_preds.reshape(n, OUT_DIM)),
                                   np.asarray(ref_o), rtol=2e-2, atol=2e-3)
        np.testing.assert_allclose(np.asarray(rotate[:, 0, 0]),
                                   np.asarray(ref_c), rtol=1e-3, atol=1e-3)
        np.testing.assert_allclose(np.asarray(rotate[:, 0, 1]),
                                   np.asarray(ref_s), rtol=1e-3, atol=1e-3)

    print("KERNEL_OK")
</pallas_src>

<mosaic_0001>
module attributes {stable_mosaic.version = 11 : i64} {
  func.func @_fused_kernel(%arg0: i32, %arg1: memref<16x128xf32, #tpu.memory_space<vmem>>, %arg2: memref<32x16xbf16, #tpu.memory_space<vmem>>, %arg3: memref<12x32xbf16, #tpu.memory_space<vmem>>, %arg4: memref<12x1xf32, #tpu.memory_space<vmem>>, %arg5: memref<14x128xf32, #tpu.memory_space<vmem>>, %arg6: memref<16x128xf32, #tpu.memory_space<vmem>>) attributes {dimension_semantics = [#tpu.dimension_semantics<parallel>], iteration_bounds = array<i64: 1>, scalar_prefetch = 0 : i64, scratch_operands = 1 : i64, tpu.core_type = #tpu.core_type<tc>, window_params = [{transform_indices = @transform_0, window_bounds = array<i64: 16, 128>}, {pipeline_mode = #tpu.pipeline_mode<synchronous>, transform_indices = @transform_1, window_bounds = array<i64: 32, 16>}, {pipeline_mode = #tpu.pipeline_mode<synchronous>, transform_indices = @transform_2, window_bounds = array<i64: 12, 32>}, {pipeline_mode = #tpu.pipeline_mode<synchronous>, transform_indices = @transform_3, window_bounds = array<i64: 12, 1>}, {transform_indices = @transform_4, window_bounds = array<i64: 14, 128>}]} {
    %c0 = arith.constant 0 : index
    %c0_0 = arith.constant 0 : index
    %0 = vector.load %arg1[%c0, %c0_0] : memref<16x128xf32, #tpu.memory_space<vmem>>, vector<16x128xf32>
    %1 = vector.extract_strided_slice %0 {offsets = [14, 0], sizes = [1, 128], strides = [1, 1]} : vector<16x128xf32> to vector<1x128xf32>
    %2 = vector.extract_strided_slice %0 {offsets = [15, 0], sizes = [1, 128], strides = [1, 1]} : vector<16x128xf32> to vector<1x128xf32>
    %3 = vector.extract_strided_slice %0 {offsets = [11, 0], sizes = [2, 128], strides = [1, 1]} : vector<16x128xf32> to vector<2x128xf32>
    %4 = vector.extract_strided_slice %0 {offsets = [14, 0], sizes = [2, 128], strides = [1, 1]} : vector<16x128xf32> to vector<2x128xf32>
    %5 = arith.subf %3, %4 : vector<2x128xf32>
    %6 = vector.extract_strided_slice %5 {offsets = [0, 0], sizes = [1, 128], strides = [1, 1]} : vector<2x128xf32> to vector<1x128xf32>
    %7 = vector.extract_strided_slice %5 {offsets = [1, 0], sizes = [1, 128], strides = [1, 1]} : vector<2x128xf32> to vector<1x128xf32>
    %8 = arith.mulf %6, %6 : vector<1x128xf32>
    %9 = arith.mulf %7, %7 : vector<1x128xf32>
    %10 = arith.addf %8, %9 : vector<1x128xf32>
    %cst = arith.constant 0.000000e+00 : f32
    %11 = vector.broadcast %cst : f32 to vector<1x128xf32>
    %12 = arith.cmpf ogt, %10, %11 : vector<1x128xf32>
    %cst_1 = arith.constant 1.000000e+00 : f32
    %13 = vector.broadcast %cst_1 : f32 to vector<1x128xf32>
    %14 = arith.select %12, %10, %13 : vector<1x128xi1>, vector<1x128xf32>
    %15 = math.rsqrt %14 : vector<1x128xf32>
    %16 = tpu.iota {dimensions = array<i32: 0>} : vector<2x128xi32>
    %c0_i32 = arith.constant 0 : i32
    %17 = vector.broadcast %c0_i32 : i32 to vector<2x128xi32>
    %18 = arith.cmpi eq, %16, %17 : vector<2x128xi32>
    %19 = vector.broadcast %15 : vector<1x128xf32> to vector<2x128xf32>
    %20 = arith.mulf %5, %19 : vector<2x128xf32>
    %cst_2 = arith.constant 1.000000e+00 : f32
    %cst_3 = arith.constant 0.000000e+00 : f32
    %21 = vector.broadcast %cst_2 : f32 to vector<2x128xf32>
    %22 = vector.broadcast %cst_3 : f32 to vector<2x128xf32>
    %23 = arith.select %18, %21, %22 : vector<2x128xi1>, vector<2x128xf32>
    %24 = vector.shape_cast %12 : vector<1x128xi1> to vector<1x128xi1>
    %25 = vector.broadcast %24 : vector<1x128xi1> to vector<2x128xi1>
    %26 = arith.select %25, %20, %23 : vector<2x128xi1>, vector<2x128xf32>
    %27 = vector.extract_strided_slice %26 {offsets = [0, 0], sizes = [1, 128], strides = [1, 1]} : vector<2x128xf32> to vector<1x128xf32>
    %28 = vector.extract_strided_slice %26 {offsets = [1, 0], sizes = [1, 128], strides = [1, 1]} : vector<2x128xf32> to vector<1x128xf32>
    %29 = vector.extract_strided_slice %0 {offsets = [0, 0], sizes = [5, 128], strides = [1, 1]} : vector<16x128xf32> to vector<5x128xf32>
    %30 = vector.broadcast %1 : vector<1x128xf32> to vector<5x128xf32>
    %31 = arith.subf %29, %30 : vector<5x128xf32>
    %32 = vector.extract_strided_slice %0 {offsets = [5, 0], sizes = [5, 128], strides = [1, 1]} : vector<16x128xf32> to vector<5x128xf32>
    %33 = vector.broadcast %2 : vector<1x128xf32> to vector<5x128xf32>
    %34 = arith.subf %32, %33 : vector<5x128xf32>
    %35 = vector.broadcast %27 : vector<1x128xf32> to vector<5x128xf32>
    %36 = arith.mulf %31, %35 : vector<5x128xf32>
    %37 = vector.broadcast %28 : vector<1x128xf32> to vector<5x128xf32>
    %38 = arith.mulf %34, %37 : vector<5x128xf32>
    %39 = arith.addf %36, %38 : vector<5x128xf32>
    %c0_4 = arith.constant 0 : index
    %c0_5 = arith.constant 0 : index
    %40 = vector.load %arg6[%c0_4, %c0_5] : memref<16x128xf32, #tpu.memory_space<vmem>>, vector<5x128xf32>
    tpu.vector_store %arg6[%c0_4, %c0_5], %39 {strides = array<i32>} : memref<16x128xf32, #tpu.memory_space<vmem>>, vector<5x128xf32>,
    %41 = arith.mulf %6, %27 : vector<1x128xf32>
    %42 = arith.mulf %7, %28 : vector<1x128xf32>
    %43 = arith.addf %41, %42 : vector<1x128xf32>
    %c5 = arith.constant 5 : index
    %c0_6 = arith.constant 0 : index
    %44 = vector.load %arg6[%c5, %c0_6] : memref<16x128xf32, #tpu.memory_space<vmem>>, vector<1x128xf32>
    tpu.vector_store %arg6[%c5, %c0_6], %43 {strides = array<i32>} : memref<16x128xf32, #tpu.memory_space<vmem>>, vector<1x128xf32>,
    %45 = vector.extract_strided_slice %0 {offsets = [10, 0], sizes = [1, 128], strides = [1, 1]} : vector<16x128xf32> to vector<1x128xf32>
    %c6 = arith.constant 6 : index
    %c0_7 = arith.constant 0 : index
    %46 = vector.load %arg6[%c6, %c0_7] : memref<16x128xf32, #tpu.memory_space<vmem>>, vector<1x128xf32>
    tpu.vector_store %arg6[%c6, %c0_7], %45 {strides = array<i32>} : memref<16x128xf32, #tpu.memory_space<vmem>>, vector<1x128xf32>,
    %cst_8 = arith.constant 1.000000e+00 : f32
    %47 = vector.broadcast %cst_8 : f32 to vector<1x128xf32>
    %c7 = arith.constant 7 : index
    %c0_9 = arith.constant 0 : index
    %48 = vector.load %arg6[%c7, %c0_9] : memref<16x128xf32, #tpu.memory_space<vmem>>, vector<1x128xf32>
    tpu.vector_store %arg6[%c7, %c0_9], %47 {strides = array<i32>} : memref<16x128xf32, #tpu.memory_space<vmem>>, vector<1x128xf32>,
    %49 = vector.broadcast %27 : vector<1x128xf32> to vector<5x128xf32>
    %50 = arith.mulf %34, %49 : vector<5x128xf32>
    %51 = vector.broadcast %28 : vector<1x128xf32> to vector<5x128xf32>
    %52 = arith.mulf %31, %51 : vector<5x128xf32>
    %53 = arith.subf %50, %52 : vector<5x128xf32>
    %c8 = arith.constant 8 : index
    %c0_10 = arith.constant 0 : index
    %54 = vector.load %arg6[%c8, %c0_10] : memref<16x128xf32, #tpu.memory_space<vmem>>, vector<5x128xf32>
    tpu.vector_store %arg6[%c8, %c0_10], %53 {strides = array<i32>} : memref<16x128xf32, #tpu.memory_space<vmem>>, vector<5x128xf32>,
    %55 = arith.mulf %7, %27 : vector<1x128xf32>
    %56 = arith.mulf %6, %28 : vector<1x128xf32>
    %57 = arith.subf %55, %56 : vector<1x128xf32>
    %c13 = arith.constant 13 : index
    %c0_11 = arith.constant 0 : index
    %58 = vector.load %arg6[%c13, %c0_11] : memref<16x128xf32, #tpu.memory_space<vmem>>, vector<1x128xf32>
    tpu.vector_store %arg6[%c13, %c0_11], %57 {strides = array<i32>} : memref<16x128xf32, #tpu.memory_space<vmem>>, vector<1x128xf32>,
    %59 = vector.extract_strided_slice %0 {offsets = [13, 0], sizes = [1, 128], strides = [1, 1]} : vector<16x128xf32> to vector<1x128xf32>
    %c14 = arith.constant 14 : index
    %c0_12 = arith.constant 0 : index
    %60 = vector.load %arg6[%c14, %c0_12] : memref<16x128xf32, #tpu.memory_space<vmem>>, vector<1x128xf32>
    tpu.vector_store %arg6[%c14, %c0_12], %59 {strides = array<i32>} : memref<16x128xf32, #tpu.memory_space<vmem>>, vector<1x128xf32>,
    %cst_13 = arith.constant 0.000000e+00 : f32
    %61 = vector.broadcast %cst_13 : f32 to vector<1x128xf32>
    %c15 = arith.constant 15 : index
    %c0_14 = arith.constant 0 : index
    %62 = vector.load %arg6[%c15, %c0_14] : memref<16x128xf32, #tpu.memory_space<vmem>>, vector<1x128xf32>
    tpu.vector_store %arg6[%c15, %c0_14], %61 {strides = array<i32>} : memref<16x128xf32, #tpu.memory_space<vmem>>, vector<1x128xf32>,
    %c0_15 = arith.constant 0 : index
    %c0_16 = arith.constant 0 : index
    %63 = vector.load %arg6[%c0_15, %c0_16] : memref<16x128xf32, #tpu.memory_space<vmem>>, vector<16x128xf32>
    %64 = arith.truncf %63 : vector<16x128xf32> to vector<16x128xbf16>
    %c0_17 = arith.constant 0 : index
    %c0_18 = arith.constant 0 : index
    %65 = vector.load %arg2[%c0_17, %c0_18] : memref<32x16xbf16, #tpu.memory_space<vmem>>, vector<32x16xbf16>
    %cst_19 = arith.constant dense<0.000000e+00> : vector<32x128xf32>
    %66 = tpu.matmul %65, %64, %cst_19 {dimension_numbers = #tpu.dot_dimension_numbers<[1], [0], [0], [1], [0, 0, 1, 1], [], []>} : vector<32x16xbf16>, vector<16x128xbf16>, vector<32x128xf32> -> vector<32x128xf32>
    %cst_20 = arith.constant 0.000000e+00 : f32
    %67 = vector.broadcast %cst_20 : f32 to vector<32x128xf32>
    %68 = arith.maximumf %66, %67 : vector<32x128xf32>
    %c0_21 = arith.constant 0 : index
    %c0_22 = arith.constant 0 : index
    %69 = vector.load %arg3[%c0_21, %c0_22] : memref<12x32xbf16, #tpu.memory_space<vmem>>, vector<12x32xbf16>
    %70 = arith.truncf %68 : vector<32x128xf32> to vector<32x128xbf16>
    %cst_23 = arith.constant dense<0.000000e+00> : vector<12x128xf32>
    %71 = tpu.matmul %69, %70, %cst_23 {dimension_numbers = #tpu.dot_dimension_numbers<[1], [0], [0], [1], [0, 0, 1, 1], [], []>} : vector<12x32xbf16>, vector<32x128xbf16>, vector<12x128xf32> -> vector<12x128xf32>
    %c0_24 = arith.constant 0 : index
    %c0_25 = arith.constant 0 : index
    %72 = vector.load %arg4[%c0_24, %c0_25] : memref<12x1xf32, #tpu.memory_space<vmem>>, vector<12x1xf32>
    %73 = vector.broadcast %72 : vector<12x1xf32> to vector<12x128xf32>
    %74 = arith.addf %71, %73 : vector<12x128xf32>
    %c0_26 = arith.constant 0 : index
    %c0_27 = arith.constant 0 : index
    %75 = vector.load %arg5[%c0_26, %c0_27] : memref<14x128xf32, #tpu.memory_space<vmem>>, vector<12x128xf32>
    tpu.vector_store %arg5[%c0_26, %c0_27], %74 {strides = array<i32>} : memref<14x128xf32, #tpu.memory_space<vmem>>, vector<12x128xf32>,
    %c12 = arith.constant 12 : index
    %c0_28 = arith.constant 0 : index
    %76 = vector.load %arg5[%c12, %c0_28] : memref<14x128xf32, #tpu.memory_space<vmem>>, vector<2x128xf32>
    tpu.vector_store %arg5[%c12, %c0_28], %26 {strides = array<i32>} : memref<14x128xf32, #tpu.memory_space<vmem>>, vector<2x128xf32>,
    return
  }
  func.func @transform_0(%arg0: i32) -> (i32, i32) {
    %c0_i32 = arith.constant 0 : i32
    %c0_i32_0 = arith.constant 0 : i32
    return %c0_i32, %arg0 : i32, i32
  }
  func.func @transform_1(%arg0: i32) -> (i32, i32) {
    %c0_i32 = arith.constant 0 : i32
    %c0_i32_0 = arith.constant 0 : i32
    %c0_i32_1 = arith.constant 0 : i32
    return %c0_i32, %c0_i32_0 : i32, i32
  }
  func.func @transform_2(%arg0: i32) -> (i32, i32) {
    %c0_i32 = arith.constant 0 : i32
    %c0_i32_0 = arith.constant 0 : i32
    %c0_i32_1 = arith.constant 0 : i32
    return %c0_i32, %c0_i32_0 : i32, i32
  }
  func.func @transform_3(%arg0: i32) -> (i32, i32) {
    %c0_i32 = arith.constant 0 : i32
    %c0_i32_0 = arith.constant 0 : i32
    %c0_i32_1 = arith.constant 0 : i32
    return %c0_i32, %c0_i32_0 : i32, i32
  }
  func.func @transform_4(%arg0: i32) -> (i32, i32) {
    %c0_i32 = arith.constant 0 : i32
    %c0_i32_0 = arith.constant 0 : i32
    return %c0_i32, %arg0 : i32, i32
  }
}

</mosaic_0001>

<bundles_post_ra>
// kernel: forward.1
= control target key start
LH: loop header
LB: loop body
LE: loop exit
PB: predicated region body
PF: predicated region fallthrough
CT: control target
= control target key end

     0   :  { %v300_v1 = vmov 0.0   ;;  %vm131_vm0 = vcmask 130048   ;;  %v301_v2 = vmov 0   ;;  %v302_v4 = vmov 1.0   ;;  %s366_s0 = inlined_call_operand.vmem [shape: f32[16,128], index: 0, kind: input, shape index: {}]   ;;  %s367_s1 = inlined_call_operand.vmem [shape: bf16[32,16], index: 1, kind: input, shape index: {}]   ;;  %s368_s2 = inlined_call_operand.vmem [shape: bf16[12,32], index: 2, kind: input, shape index: {}]   ;;  %s369_s3 = inlined_call_operand.vmem [shape: f32[12,1], index: 3, kind: input, shape index: {}]   ;;  %s370_s4 = inlined_call_operand.vmem [shape: f32[14,128], index: 4, kind: output, shape index: {}]  }
   0x1   :  { %v19_v0 = vld [vmem:[%s366_s0 + $0x8] sm:$0xff]  ;;  %113 = vst [vmem:[#allocation2 + $0xf] sm:$0x1] %v300_v1  ;;  %282 = vmatprep.subr.bf16.mxu1 %v300_v1  ;;  %294 = vset.pattern.permute.xlu0 %v301_v2  ;;  %89 = vst [vmem:[#allocation2 + $0x7] sm:$0x1] %v302_v4  ;;  %v295_v5 = vld [vmem:[%s367_s1] sm:$0xff]   ;;  %v32_v11 = vlaneseq }
   0x2   :  { %v21_v3 = vrot.slane %v19_v0, 3  ;;  %88 = vst [vmem:[#allocation2 + $0x4] sm:$0x4] %v19_v0  ;;  %112 = vst [vmem:[#allocation2 + $0x9] sm:$0x20] %v19_v0  ;;  %278 = vmatprep.mubr.msk.bf16.mxu0 %vm131_vm0, %v295_v5  ;;  %v18_v21 = vld [vmem:[%s366_s0] sm:$0xff] }
   0x3   :  { %v33_v12 = vshrl.u32 %v32_v11, 7  ;;  %vm75_vm4 = vcmask 1042432   ;;  %v296_v58 = vld [vmem:[%s367_s1 + $0x8] sm:$0xff]   ;;  %vm303_vm5 = vmmov 0   ;;  %v195_v59 = vld [vmem:[%s369_s3] sm:$0xff]  ;;  %vm212_vm6 = vcmask 261120  }
   0x4   :  { %v23_v6 = vsub.f32 %v19_v0, %v21_v3  ;;  %286 = vmatprep.mubr.msk.bf16.mxu1 %vm303_vm5, %v300_v1  ;;  %199 = vperm.xlu0 %294, %v195_v59   ;;  %v196_v60 = vld [vmem:[%s369_s3 + $0x8] sm:$0xf] }
   0x5   :  { %v37_v13 = vsub.s32 3, %v33_v12  ;;  %vm34_vm2 = vcmp.eq.s32.totalorder %v33_v12, 0  ;;  %v58_v15 = vsub.s32 7, %v33_v12  ;;  %v53_v16 = vsub.s32 6, %v33_v12 }
   0x6   :  { %v24_v7 = vmul.f32 %v23_v6, %v23_v6  ;;  %v40_v17 = vsel %vm34_vm2, 1.0, %v300_v1  ;;  %v69_v25 = vsub.s32 4, %v33_v12 }
   0x7   :  { %v59_v20 = vrot.slane %v19_v0, %v58_v15  ;;  %v48_v23 = vrot.slane %v40_v17, 5  ;;  %v54_v24 = vrot.slane %v19_v0, %v53_v16 }
   0x8   :  { %v26_v8 = vrot.slane %v24_v7, 1  ;;  %204 = vperm.xlu0 %294, %v196_v60  }
   0x9   :  { %v60_v27 = vsub.f32 %v18_v21, %v59_v20  ;;  %v61_v28 = vsub.f32 %v19_v0, %v59_v20  ;;  %v55_v30 = vsub.f32 %v18_v21, %v54_v24 }
   0xa   :  { %v28_v9 = vadd.f32 %v26_v8, %v24_v7  ;;  %v297_v8 = vld [vmem:[%s368_s2] sm:$0x3f]  }
   0xc   :  { %vm29_vm1 = vcmp.gt.f32.partialorder %v28_v9, 0.0 }
   0xd   :  { %v30_v10 = vsel %vm29_vm1, %v28_v9, 1.0  ;;  %v41_v14 = vsel %vm29_vm1, 1, %v301_v2 }
   0xe   :  { %298 = vrsqrt.f32 %v30_v10  ;;  %v45_v18 = vrot.slane %v41_v14, %v37_v13 }
  0x10   :  { %vm46_vm3 = vcmp.eq.s32.totalorder %v45_v18, 1 }
  0x1b   :  { %v299_v19 = vpop.eup %298 }
  0x1c   :  { %v38_v22 = vrot.slane %v299_v19, %v37_v13 }
  0x1e   :  { %v39_v26 = vmul.f32 %v38_v22, %v23_v6 }
  0x20   :  { %v50_v29 = vsel %vm46_vm3, %v39_v26, %v48_v23 }
  0x21   :  { %v65_v31 = vrot.slane %v50_v29, %v37_v13  ;;  %v70_v32 = vrot.slane %v50_v29, %v69_v25  ;;  %v82_v33 = vmul.f32 %v50_v29, %v23_v6  ;;  %v101_v34 = vrot.slane %v50_v29, 7  ;;  %259 = vst [vmem:[%s370_s4 + $0x9] sm:$0x18] %v50_v29 }
  0x22   :  { %v104_v35 = vrot.slane %v50_v29, 1 }
  0x23   :  { %v66_v36 = vmul.f32 %v65_v31, %v55_v30  ;;  %v71_v37 = vmul.f32 %v70_v32, %v60_v27  ;;  %v72_v38 = vmul.f32 %v70_v32, %v61_v28  ;;  %v84_v39 = vrot.slane %v82_v33, 1 }
  0x24   :  { %v90_v40 = vmul.f32 %v65_v31, %v60_v27  ;;  %v91_v41 = vmul.f32 %v65_v31, %v61_v28  ;;  %v92_v42 = vmul.f32 %v70_v32, %v55_v30  ;;  %v103_v43 = vmul.f32 %v101_v34, %v23_v6 }
  0x25   :  { %v76_v44 = vrot.slane %v71_v37, 5  ;;  %v77_v45 = vrot.slane %v72_v38, 5  ;;  %v86_v46 = vadd.f32 %v84_v39, %v82_v33  ;;  %v106_v47 = vmul.f32 %v104_v35, %v23_v6 }
  0x26   :  { %v94_v48 = vrot.slane %v92_v42, 3 }
  0x27   :  { %v78_v49 = vsel %vm75_vm4, %v76_v44, %v77_v45  ;;  %87 = vst [vmem:[#allocation2 + $0x2] sm:$0x8] %v86_v46  ;;  %v108_v50 = vrot.slane %v106_v47, 7 }
  0x28   :  { %v80_v51 = vadd.f32 %v78_v49, %v66_v36  ;;  %v96_v52 = vsub.f32 %v90_v40, %v94_v48  ;;  %v97_v53 = vsub.f32 %v91_v41, %v94_v48 }
  0x29   :  { %v110_v54 = vsub.f32 %v103_v43, %v108_v50 }
  0x2a   :  { %81 = vst [vmem:[#allocation2] sm:$0x1f] %v80_v51  ;;  %98 = vst [vmem:[#allocation2 + $0x3] sm:$0xe0] %v96_v52 }
  0x2b   :  { %99 = vst [vmem:[#allocation2 + $0xb] sm:$0x3] %v97_v53  ;;  %111 = vst [vmem:[#allocation2 + $0x9] sm:$0x10] %v110_v54 }
  0x31   :  { %v114_v55 = vld [vmem:[#allocation2] sm:$0xff] }
  0x32   :  { %v115_v56 = vld [vmem:[#allocation2 + $0x8] sm:$0xff] }
  0x33   :  { %v116_v57 = vpack.c.bf16 %v115_v56, %v114_v55 }
  0x35   :  { %276 = vmatprep.subr.bf16.mxu0 %v116_v57 }
  0x36   :  { %277 = vmatpush3.bf16.msra.mxu0 %v116_v57 }
  0x39   :  { %279 = vmatmul.mubr.msk.bf16.vlgmr.msra.gmra.mxu0 %vm131_vm0, %v296_v58 }
  0x7f   :  { %v200_v9 = vpop.permute.xlu0 %199 }
  0x83   :  { %v205_v13 = vpop.permute.xlu0 %204 }
  0xf9   :  { %v280_v61 = vpop.f32.mrf.mxu0 }
  0xfa   :  { %v189_v0 = vmax.f32 %v280_v61, 0.0 }
  0xfb   :  { %v172_v62 = vpop.f32.mrf.mxu0 }
  0xfc   :  { %v187_v6 = vmax.f32 %v172_v62, 0.0 }
  0xfd   :  { %v281_v63 = vpop.f32.mrf.mxu0 }
  0xfe   :  { %v190_v2 = vmax.f32 %v281_v63, 0.0 }
  0xff   :  { %v175_v3 = vpop.f32.mrf.mxu0 }
 0x100   :  { %v188_v4 = vmax.f32 %v175_v3, 0.0  ;;  %v194_v5 = vpack.c.bf16 %v190_v2, %v189_v0 }
 0x102   :  { %283 = vmatpush3.bf16.msra.mxu1 %v194_v5  ;;  %v193_v7 = vpack.c.bf16 %v188_v4, %v187_v6 }
 0x103   :  { %284 = vmatprep.subr.bf16.mxu1 %v300_v1 }
 0x106   :  { %285 = vmatpush3.bf16.msra.mxu1 %v193_v7 }
 0x109   :  { %287 = vmatmul.mubr.msk.bf16.vlgmr.msra.gmra.mxu1 %vm212_vm6, %v297_v8 }
 0x1c9   :  { %v250_v10 = vpop.f32.mrf.mxu1 }
 0x1ca   :  { %v251_v11 = vadd.f32 %v250_v10, %v200_v9 }
 0x1cb   :  { %v288_v12 = vpop.f32.mrf.mxu1 }
 0x1cc   :  { %257 = vst [vmem:[%s370_s4] sm:$0xff] %v251_v11 }
 0x1cd   :  { %v253_v14 = vpop.f32.mrf.mxu1 }
 0x1ce   :  { %v254_v15 = vadd.f32 %v253_v14, %v205_v13 }
 0x1cf   :  { %v289_v1 = vpop.f32.mrf.mxu1 }
 0x1d0   :  { %258 = vst [vmem:[%s370_s4 + $0x8] sm:$0xf] %v254_v15 }

</bundles_post_ra>
